<compile_context>
chip_gen: v5e
topology: v5e:2x2
jax: 0.10.0
libtpu: 0.0.40
codegen_flags: <defaults>
</compile_context>

<pallas_src>
import functools

import jax
import jax.numpy as jnp
from jax.experimental import pallas as pl
from jax.experimental.pallas import tpu as pltpu

LANE = 128
_VMEM_LIMIT = 48 * 1024 * 1024  # under the 64 MiB per-core VMEM on v7x


def _round_up(x, m):
    return (x + m - 1) // m * m


def _pad2(a, rows, cols):
    return jnp.pad(a, ((0, rows - a.shape[0]), (0, cols - a.shape[1])))


# -----------------------------------------------------------------------------
# Kernel 0: feature projection  XW1 = X @ W1   (hoisted out of the A-tile loop)
# -----------------------------------------------------------------------------
def _project_kernel(x_ref, w_ref, o_ref):
    o_ref[...] = jnp.dot(
        x_ref[...], w_ref[...], preferred_element_type=jnp.float32
    ).astype(o_ref.dtype)


def _project(x, w, *, tm):
    n_pad, f = x.shape
    d_pad = w.shape[1]
    return pl.pallas_call(
        _project_kernel,
        out_shape=jax.ShapeDtypeStruct((n_pad, d_pad), jnp.bfloat16),
        grid=(n_pad // tm,),
        in_specs=[
            pl.BlockSpec((tm, f), lambda i: (i, 0)),
            pl.BlockSpec((f, d_pad), lambda i: (0, 0)),
        ],
        out_specs=pl.BlockSpec((tm, d_pad), lambda i: (i, 0)),
        compiler_params=pltpu.CompilerParams(
            dimension_semantics=("parallel",),
            vmem_limit_bytes=_VMEM_LIMIT,
        ),
    )(x, w)


# -----------------------------------------------------------------------------
# Kernel 1: layer-1 aggregation fused with bias + ReLU + layer-2 projection:
#   HW2 = relu(A_hat @ XW1 + b1) @ W2
# -----------------------------------------------------------------------------
def _layer1_kernel(a_ref, xw_ref, b1_ref, w2_ref, o_ref, acc_ref):
    k = pl.program_id(1)

    @pl.when(k == 0)
    def _():
        acc_ref[...] = jnp.zeros_like(acc_ref)

    acc_ref[...] += jnp.dot(
        a_ref[...], xw_ref[...], preferred_element_type=jnp.float32
    )

    @pl.when(k == pl.num_programs(1) - 1)
    def _():
        h = jnp.maximum(acc_ref[...] + b1_ref[...], 0.0)
        # TODO(synk): training-mode dropout (pltpu.prng_random_bits mask) not
        # emitted; the module is evaluated with training=False -> identity.
        o_ref[...] = jnp.dot(
            h.astype(jnp.bfloat16), w2_ref[...],
            preferred_element_type=jnp.float32,
        ).astype(o_ref.dtype)


def _layer1(a_hat, xw1, b1, w2, *, tm, tk):
    n_pad = a_hat.shape[0]
    hid_pad = xw1.shape[1]
    c_pad = w2.shape[1]
    return pl.pallas_call(
        _layer1_kernel,
        out_shape=jax.ShapeDtypeStruct((n_pad, c_pad), jnp.bfloat16),
        grid=(n_pad // tm, n_pad // tk),
        in_specs=[
            pl.BlockSpec((tm, tk), lambda i, k: (i, k)),
            pl.BlockSpec((tk, hid_pad), lambda i, k: (k, 0)),
            pl.BlockSpec((1, hid_pad), lambda i, k: (0, 0)),
            pl.BlockSpec((hid_pad, c_pad), lambda i, k: (0, 0)),
        ],
        out_specs=pl.BlockSpec((tm, c_pad), lambda i, k: (i, 0)),
        scratch_shapes=[pltpu.VMEM((tm, hid_pad), jnp.float32)],
        compiler_params=pltpu.CompilerParams(
            dimension_semantics=("parallel", "arbitrary"),
            vmem_limit_bytes=_VMEM_LIMIT,
        ),
    )(a_hat, xw1, b1, w2)


# -----------------------------------------------------------------------------
# Kernel 2: layer-2 aggregation fused with bias + masked log_softmax:
#   out = log_softmax(A_hat @ HW2 + b2)
# -----------------------------------------------------------------------------
def _layer2_kernel(a_ref, hw_ref, b2_ref, o_ref, acc_ref, *, num_classes):
    k = pl.program_id(1)

    @pl.when(k == 0)
    def _():
        acc_ref[...] = jnp.zeros_like(acc_ref)

    acc_ref[...] += jnp.dot(
        a_ref[...], hw_ref[...], preferred_element_type=jnp.float32
    )

    @pl.when(k == pl.num_programs(1) - 1)
    def _():
        logits = acc_ref[...] + b2_ref[...]
        # Mask lane-padded class columns so they never perturb the max / sum.
        col = jax.lax.broadcasted_iota(jnp.int32, logits.shape, 1)
        logits = jnp.where(col < num_classes, logits, -1e30)
        m = jnp.max(logits, axis=-1, keepdims=True)
        z = logits - m
        lse = jnp.log(jnp.sum(jnp.exp(z), axis=-1, keepdims=True))
        o_ref[...] = (z - lse).astype(o_ref.dtype)


def _layer2(a_hat, hw2, b2, *, tm, tk, num_classes):
    n_pad = a_hat.shape[0]
    c_pad = hw2.shape[1]
    kernel = functools.partial(_layer2_kernel, num_classes=num_classes)
    return pl.pallas_call(
        kernel,
        out_shape=jax.ShapeDtypeStruct((n_pad, c_pad), jnp.float32),
        grid=(n_pad // tm, n_pad // tk),
        in_specs=[
            pl.BlockSpec((tm, tk), lambda i, k: (i, k)),
            pl.BlockSpec((tk, c_pad), lambda i, k: (k, 0)),
            pl.BlockSpec((1, c_pad), lambda i, k: (0, 0)),
        ],
        out_specs=pl.BlockSpec((tm, c_pad), lambda i, k: (i, 0)),
        scratch_shapes=[pltpu.VMEM((tm, c_pad), jnp.float32)],
        compiler_params=pltpu.CompilerParams(
            dimension_semantics=("parallel", "arbitrary"),
            vmem_limit_bytes=_VMEM_LIMIT,
        ),
    )(a_hat, hw2, b2)


# -----------------------------------------------------------------------------
# Forward wrapper: padding / casting glue + the three pallas_calls
# -----------------------------------------------------------------------------
@jax.jit
def gcn_net_forward(a_hat, x, w1, b1, w2, b2):
    """log_softmax(A_hat @ relu(A_hat @ (X W1) + b1) @ W2 + b2)."""
    n, f_in = x.shape
    hid = w1.shape[1]
    c = w2.shape[1]

    # ---- layout plumbing: row-tile + lane padding (plain JAX glue) ----
    n_pad = _round_up(n, 128)
    tm = min(512, n_pad)                 # tile sized against 64 MiB v7x VMEM
    n_pad = _round_up(n_pad, tm)
    hid_pad = _round_up(hid, LANE)
    c_pad = _round_up(c, LANE)

    a_p = _pad2(a_hat, n_pad, n_pad).astype(jnp.bfloat16)
    x_p = _pad2(x, n_pad, f_in).astype(jnp.bfloat16)
    w1_p = _pad2(w1, f_in, hid_pad).astype(jnp.bfloat16)
    w2_p = _pad2(w2, hid_pad, c_pad).astype(jnp.bfloat16)
    b1_p = _pad2(b1, 1, hid_pad).astype(jnp.float32)
    b2_p = _pad2(b2, 1, c_pad).astype(jnp.float32)

    xw1 = _project(x_p, w1_p, tm=tm)                      # (n_pad, hid_pad) bf16
    hw2 = _layer1(a_p, xw1, b1_p, w2_p, tm=tm, tk=tm)     # (n_pad, c_pad)  bf16
    out = _layer2(a_p, hw2, b2_p, tm=tm, tk=tm, num_classes=c)
    return out[:n, :c]


def build_gcn_norm_dense(edge_index, edge_weight, num_nodes):
    """PyG gcn_norm (add_self_loops=True) as a dense A_hat with
    out = A_hat @ x reproducing GCNConv's message passing."""
    row, col = edge_index[0], edge_index[1]
    loop = jnp.arange(num_nodes, dtype=row.dtype)
    row = jnp.concatenate([row, loop])
    col = jnp.concatenate([col, loop])
    w = jnp.concatenate([edge_weight, jnp.ones((num_nodes,), jnp.float32)])
    deg = jnp.zeros((num_nodes,), jnp.float32).at[col].add(w)
    dinv = jnp.where(deg > 0, 1.0 / jnp.sqrt(deg), 0.0)
    norm = dinv[row] * w * dinv[col]
    # aggregate at target: out[col] += norm * x[row]  =>  A_hat[col, row] = norm
    a_hat = jnp.zeros((num_nodes, num_nodes), jnp.float32).at[col, row].add(norm)
    return a_hat


def gcn_net_reference(a_hat, x, w1, b1, w2, b2):
    h = jnp.maximum(a_hat @ (x @ w1) + b1, 0.0)
    logits = a_hat @ (h @ w2) + b2
    return jax.nn.log_softmax(logits, axis=-1)


if __name__ == "__main__":
    key = jax.random.PRNGKey(0)

    # Small synthetic graph consistent with the module's forward:
    #   N nodes, F input features, hidden_dim=16, num_classes=5, num_edge=3
    N, F_IN, HID, C, K = 32, 8, 16, 5, 3

    k_x, k_w1, k_w2, k_b1, k_b2, k_ew = jax.random.split(key, 6)

    x = jax.random.normal(k_x, (N, F_IN), dtype=jnp.float32)

    # deterministic edge_index: each node i -> (i+1..i+K) mod N, random weights
    src = jnp.repeat(jnp.arange(N, dtype=jnp.int32), K)
    dst = (src + jnp.tile(jnp.arange(1, K + 1, dtype=jnp.int32), N)) % N
    edge_index = jnp.stack([src, dst], axis=0)             # (2, N*K)
    edge_weight = jax.random.uniform(k_ew, (N * K,), jnp.float32, 0.1, 1.0)

    # GCNConv parameters (glorot-like init, small random biases)
    w1 = jax.random.normal(k_w1, (F_IN, HID), jnp.float32) * (2.0 / (F_IN + HID)) ** 0.5
    b1 = jax.random.normal(k_b1, (1, HID), jnp.float32) * 0.1
    w2 = jax.random.normal(k_w2, (HID, C), jnp.float32) * (2.0 / (HID + C)) ** 0.5
    b2 = jax.random.normal(k_b2, (1, C), jnp.float32) * 0.1

    # normalized dense adjacency (glue, plain JAX)
    a_hat = build_gcn_norm_dense(edge_index, edge_weight, N)

    out = gcn_net_forward(a_hat, x, w1, b1, w2, b2)
    out = jax.block_until_ready(out)

    assert out.shape == (N, C)
    # rows of log_softmax must exp-sum to 1
    assert bool(jnp.allclose(jnp.exp(out).sum(-1), 1.0, atol=1e-3))
    # loose check vs f32 reference (kernel uses bf16 MXU inputs, f32 accumulation)
    ref = gcn_net_reference(a_hat, x, w1, b1, w2, b2)
    err = float(jnp.max(jnp.abs(out - ref)))
    assert err < 0.2, f"max abs err vs f32 reference: {err}"

    print("KERNEL_OK")
</pallas_src>

<mosaic_0001>
module attributes {stable_mosaic.version = 11 : i64} {
  func.func @_project_kernel(%arg0: i32, %arg1: memref<128x8xbf16, #tpu.memory_space<vmem>>, %arg2: memref<8x128xbf16, #tpu.memory_space<vmem>>, %arg3: memref<128x128xbf16, #tpu.memory_space<vmem>>) attributes {dimension_semantics = [#tpu.dimension_semantics<parallel>], iteration_bounds = array<i64: 1>, scalar_prefetch = 0 : i64, scratch_operands = 0 : i64, tpu.core_type = #tpu.core_type<tc>, window_params = [{transform_indices = @transform_0, window_bounds = array<i64: 128, 8>}, {pipeline_mode = #tpu.pipeline_mode<synchronous>, transform_indices = @transform_1, window_bounds = array<i64: 8, 128>}, {transform_indices = @transform_2, window_bounds = array<i64: 128, 128>}]} {
    %c0 = arith.constant 0 : index
    %c0_0 = arith.constant 0 : index
    %0 = vector.load %arg1[%c0, %c0_0] : memref<128x8xbf16, #tpu.memory_space<vmem>>, vector<128x8xbf16>
    %c0_1 = arith.constant 0 : index
    %c0_2 = arith.constant 0 : index
    %1 = vector.load %arg2[%c0_1, %c0_2] : memref<8x128xbf16, #tpu.memory_space<vmem>>, vector<8x128xbf16>
    %cst = arith.constant dense<0.000000e+00> : vector<128x128xf32>
    %2 = tpu.matmul %0, %1, %cst {dimension_numbers = #tpu.dot_dimension_numbers<[1], [0], [0], [1], [0, 0, 1, 1], [], []>} : vector<128x8xbf16>, vector<8x128xbf16>, vector<128x128xf32> -> vector<128x128xf32>
    %3 = arith.truncf %2 : vector<128x128xf32> to vector<128x128xbf16>
    %c0_3 = arith.constant 0 : index
    %c0_4 = arith.constant 0 : index
    %4 = vector.load %arg3[%c0_3, %c0_4] : memref<128x128xbf16, #tpu.memory_space<vmem>>, vector<128x128xbf16>
    tpu.vector_store %arg3[%c0_3, %c0_4], %3 {strides = array<i32>} : memref<128x128xbf16, #tpu.memory_space<vmem>>, vector<128x128xbf16>,
    return
  }
  func.func @transform_0(%arg0: i32) -> (i32, i32) {
    %c0_i32 = arith.constant 0 : i32
    %c0_i32_0 = arith.constant 0 : i32
    return %arg0, %c0_i32 : i32, i32
  }
  func.func @transform_1(%arg0: i32) -> (i32, i32) {
    %c0_i32 = arith.constant 0 : i32
    %c0_i32_0 = arith.constant 0 : i32
    %c0_i32_1 = arith.constant 0 : i32
    return %c0_i32, %c0_i32_0 : i32, i32
  }
  func.func @transform_2(%arg0: i32) -> (i32, i32) {
    %c0_i32 = arith.constant 0 : i32
    %c0_i32_0 = arith.constant 0 : i32
    return %arg0, %c0_i32 : i32, i32
  }
}

module attributes {stable_mosaic.version = 11 : i64} {
  func.func @_layer1_kernel(%arg0: i32, %arg1: i32, %arg2: memref<128x128xbf16, #tpu.memory_space<vmem>>, %arg3: memref<128x128xbf16, #tpu.memory_space<vmem>>, %arg4: memref<1x128xf32, #tpu.memory_space<vmem>>, %arg5: memref<128x128xbf16, #tpu.memory_space<vmem>>, %arg6: memref<128x128xbf16, #tpu.memory_space<vmem>>, %arg7: memref<128x128xf32, #tpu.memory_space<vmem>>) attributes {dimension_semantics = [#tpu.dimension_semantics<parallel>, #tpu.dimension_semantics<arbitrary>], iteration_bounds = array<i64: 1, 1>, scalar_prefetch = 0 : i64, scratch_operands = 1 : i64, tpu.core_type = #tpu.core_type<tc>, window_params = [{transform_indices = @transform_0, window_bounds = array<i64: 128, 128>}, {transform_indices = @transform_1, window_bounds = array<i64: 128, 128>}, {pipeline_mode = #tpu.pipeline_mode<synchronous>, transform_indices = @transform_2, window_bounds = array<i64: 1, 128>}, {pipeline_mode = #tpu.pipeline_mode<synchronous>, transform_indices = @transform_3, window_bounds = array<i64: 128, 128>}, {transform_indices = @transform_4, window_bounds = array<i64: 128, 128>}]} {
    %c0_i32 = arith.constant 0 : i32
    %0 = arith.cmpi eq, %arg1, %c0_i32 : i32
    %1 = arith.extui %0 : i1 to i32
    %c0_i32_0 = arith.constant 0 : i32
    %2 = arith.cmpi ne, %1, %c0_i32_0 : i32
    scf.if %2 {
      %cst_10 = arith.constant 0.000000e+00 : f32
      %12 = vector.broadcast %cst_10 : f32 to vector<128x128xf32>
      %c0_11 = arith.constant 0 : index
      %c0_12 = arith.constant 0 : index
      %13 = vector.load %arg7[%c0_11, %c0_12] : memref<128x128xf32, #tpu.memory_space<vmem>>, vector<128x128xf32>
      tpu.vector_store %arg7[%c0_11, %c0_12], %12 {strides = array<i32>} : memref<128x128xf32, #tpu.memory_space<vmem>>, vector<128x128xf32>,
    } else {
    }
    %c0 = arith.constant 0 : index
    %c0_1 = arith.constant 0 : index
    %3 = vector.load %arg7[%c0, %c0_1] : memref<128x128xf32, #tpu.memory_space<vmem>>, vector<128x128xf32>
    %c0_2 = arith.constant 0 : index
    %c0_3 = arith.constant 0 : index
    %4 = vector.load %arg2[%c0_2, %c0_3] : memref<128x128xbf16, #tpu.memory_space<vmem>>, vector<128x128xbf16>
    %c0_4 = arith.constant 0 : index
    %c0_5 = arith.constant 0 : index
    %5 = vector.load %arg3[%c0_4, %c0_5] : memref<128x128xbf16, #tpu.memory_space<vmem>>, vector<128x128xbf16>
    %cst = arith.constant dense<0.000000e+00> : vector<128x128xf32>
    %6 = tpu.matmul %4, %5, %cst {dimension_numbers = #tpu.dot_dimension_numbers<[1], [0], [0], [1], [0, 0, 1, 1], [], []>} : vector<128x128xbf16>, vector<128x128xbf16>, vector<128x128xf32> -> vector<128x128xf32>
    %7 = arith.addf %3, %6 : vector<128x128xf32>
    %c0_6 = arith.constant 0 : index
    %c0_7 = arith.constant 0 : index
    %8 = vector.load %arg7[%c0_6, %c0_7] : memref<128x128xf32, #tpu.memory_space<vmem>>, vector<128x128xf32>
    tpu.vector_store %arg7[%c0_6, %c0_7], %7 {strides = array<i32>} : memref<128x128xf32, #tpu.memory_space<vmem>>, vector<128x128xf32>,
    %c0_i32_8 = arith.constant 0 : i32
    %9 = arith.cmpi eq, %arg1, %c0_i32_8 : i32
    %10 = arith.extui %9 : i1 to i32
    %c0_i32_9 = arith.constant 0 : i32
    %11 = arith.cmpi ne, %10, %c0_i32_9 : i32
    scf.if %11 {
      %c0_10 = arith.constant 0 : index
      %c0_11 = arith.constant 0 : index
      %12 = vector.load %arg7[%c0_10, %c0_11] : memref<128x128xf32, #tpu.memory_space<vmem>>, vector<128x128xf32>
      %c0_12 = arith.constant 0 : index
      %c0_13 = arith.constant 0 : index
      %13 = vector.load %arg4[%c0_12, %c0_13] : memref<1x128xf32, #tpu.memory_space<vmem>>, vector<1x128xf32>
      %14 = vector.broadcast %13 : vector<1x128xf32> to vector<128x128xf32>
      %15 = arith.addf %12, %14 : vector<128x128xf32>
      %cst_14 = arith.constant 0.000000e+00 : f32
      %16 = vector.broadcast %cst_14 : f32 to vector<128x128xf32>
      %17 = arith.maximumf %15, %16 : vector<128x128xf32>
      %18 = arith.truncf %17 : vector<128x128xf32> to vector<128x128xbf16>
      %c0_15 = arith.constant 0 : index
      %c0_16 = arith.constant 0 : index
      %19 = vector.load %arg5[%c0_15, %c0_16] : memref<128x128xbf16, #tpu.memory_space<vmem>>, vector<128x128xbf16>
      %cst_17 = arith.constant dense<0.000000e+00> : vector<128x128xf32>
      %20 = tpu.matmul %18, %19, %cst_17 {dimension_numbers = #tpu.dot_dimension_numbers<[1], [0], [0], [1], [0, 0, 1, 1], [], []>} : vector<128x128xbf16>, vector<128x128xbf16>, vector<128x128xf32> -> vector<128x128xf32>
      %21 = arith.truncf %20 : vector<128x128xf32> to vector<128x128xbf16>
      %c0_18 = arith.constant 0 : index
      %c0_19 = arith.constant 0 : index
      %22 = vector.load %arg6[%c0_18, %c0_19] : memref<128x128xbf16, #tpu.memory_space<vmem>>, vector<128x128xbf16>
      tpu.vector_store %arg6[%c0_18, %c0_19], %21 {strides = array<i32>} : memref<128x128xbf16, #tpu.memory_space<vmem>>, vector<128x128xbf16>,
    } else {
    }
    return
  }
  func.func @transform_0(%arg0: i32, %arg1: i32) -> (i32, i32) {
    %c0_i32 = arith.constant 0 : i32
    return %arg0, %arg1 : i32, i32
  }
  func.func @transform_1(%arg0: i32, %arg1: i32) -> (i32, i32) {
    %c0_i32 = arith.constant 0 : i32
    %c0_i32_0 = arith.constant 0 : i32
    return %arg1, %c0_i32 : i32, i32
  }
  func.func @transform_2(%arg0: i32, %arg1: i32) -> (i32, i32) {
    %c0_i32 = arith.constant 0 : i32
    %c0_i32_0 = arith.constant 0 : i32
    %c0_i32_1 = arith.constant 0 : i32
    return %c0_i32, %c0_i32_0 : i32, i32
  }
  func.func @transform_3(%arg0: i32, %arg1: i32) -> (i32, i32) {
    %c0_i32 = arith.constant 0 : i32
    %c0_i32_0 = arith.constant 0 : i32
    %c0_i32_1 = arith.constant 0 : i32
    return %c0_i32, %c0_i32_0 : i32, i32
  }
  func.func @transform_4(%arg0: i32, %arg1: i32) -> (i32, i32) {
    %c0_i32 = arith.constant 0 : i32
    %c0_i32_0 = arith.constant 0 : i32
    return %arg0, %c0_i32 : i32, i32
  }
}

module attributes {stable_mosaic.version = 11 : i64} {
  func.func @_layer2_kernel(%arg0: i32, %arg1: i32, %arg2: memref<128x128xbf16, #tpu.memory_space<vmem>>, %arg3: memref<128x128xbf16, #tpu.memory_space<vmem>>, %arg4: memref<1x128xf32, #tpu.memory_space<vmem>>, %arg5: memref<128x128xf32, #tpu.memory_space<vmem>>, %arg6: memref<128x128xf32, #tpu.memory_space<vmem>>) attributes {dimension_semantics = [#tpu.dimension_semantics<parallel>, #tpu.dimension_semantics<arbitrary>], iteration_bounds = array<i64: 1, 1>, scalar_prefetch = 0 : i64, scratch_operands = 1 : i64, tpu.core_type = #tpu.core_type<tc>, window_params = [{transform_indices = @transform_0, window_bounds = array<i64: 128, 128>}, {transform_indices = @transform_1, window_bounds = array<i64: 128, 128>}, {pipeline_mode = #tpu.pipeline_mode<synchronous>, transform_indices = @transform_2, window_bounds = array<i64: 1, 128>}, {transform_indices = @transform_3, window_bounds = array<i64: 128, 128>}]} {
    %c0_i32 = arith.constant 0 : i32
    %0 = arith.cmpi eq, %arg1, %c0_i32 : i32
    %1 = arith.extui %0 : i1 to i32
    %c0_i32_0 = arith.constant 0 : i32
    %2 = arith.cmpi ne, %1, %c0_i32_0 : i32
    scf.if %2 {
      %cst_10 = arith.constant 0.000000e+00 : f32
      %12 = vector.broadcast %cst_10 : f32 to vector<128x128xf32>
      %c0_11 = arith.constant 0 : index
      %c0_12 = arith.constant 0 : index
      %13 = vector.load %arg6[%c0_11, %c0_12] : memref<128x128xf32, #tpu.memory_space<vmem>>, vector<128x128xf32>
      tpu.vector_store %arg6[%c0_11, %c0_12], %12 {strides = array<i32>} : memref<128x128xf32, #tpu.memory_space<vmem>>, vector<128x128xf32>,
    } else {
    }
    %c0 = arith.constant 0 : index
    %c0_1 = arith.constant 0 : index
    %3 = vector.load %arg6[%c0, %c0_1] : memref<128x128xf32, #tpu.memory_space<vmem>>, vector<128x128xf32>
    %c0_2 = arith.constant 0 : index
    %c0_3 = arith.constant 0 : index
    %4 = vector.load %arg2[%c0_2, %c0_3] : memref<128x128xbf16, #tpu.memory_space<vmem>>, vector<128x128xbf16>
    %c0_4 = arith.constant 0 : index
    %c0_5 = arith.constant 0 : index
    %5 = vector.load %arg3[%c0_4, %c0_5] : memref<128x128xbf16, #tpu.memory_space<vmem>>, vector<128x128xbf16>
    %cst = arith.constant dense<0.000000e+00> : vector<128x128xf32>
    %6 = tpu.matmul %4, %5, %cst {dimension_numbers = #tpu.dot_dimension_numbers<[1], [0], [0], [1], [0, 0, 1, 1], [], []>} : vector<128x128xbf16>, vector<128x128xbf16>, vector<128x128xf32> -> vector<128x128xf32>
    %7 = arith.addf %3, %6 : vector<128x128xf32>
    %c0_6 = arith.constant 0 : index
    %c0_7 = arith.constant 0 : index
    %8 = vector.load %arg6[%c0_6, %c0_7] : memref<128x128xf32, #tpu.memory_space<vmem>>, vector<128x128xf32>
    tpu.vector_store %arg6[%c0_6, %c0_7], %7 {strides = array<i32>} : memref<128x128xf32, #tpu.memory_space<vmem>>, vector<128x128xf32>,
    %c0_i32_8 = arith.constant 0 : i32
    %9 = arith.cmpi eq, %arg1, %c0_i32_8 : i32
    %10 = arith.extui %9 : i1 to i32
    %c0_i32_9 = arith.constant 0 : i32
    %11 = arith.cmpi ne, %10, %c0_i32_9 : i32
    scf.if %11 {
      %c0_10 = arith.constant 0 : index
      %c0_11 = arith.constant 0 : index
      %12 = vector.load %arg6[%c0_10, %c0_11] : memref<128x128xf32, #tpu.memory_space<vmem>>, vector<128x128xf32>
      %c0_12 = arith.constant 0 : index
      %c0_13 = arith.constant 0 : index
      %13 = vector.load %arg4[%c0_12, %c0_13] : memref<1x128xf32, #tpu.memory_space<vmem>>, vector<1x128xf32>
      %14 = vector.broadcast %13 : vector<1x128xf32> to vector<128x128xf32>
      %15 = arith.addf %12, %14 : vector<128x128xf32>
      %16 = tpu.iota {dimensions = array<i32: 1>} : vector<128x128xi32>
      %c5_i32 = arith.constant 5 : i32
      %17 = vector.broadcast %c5_i32 : i32 to vector<128x128xi32>
      %18 = arith.cmpi slt, %16, %17 : vector<128x128xi32>
      %cst_14 = arith.constant -1.000000e+30 : f32
      %19 = vector.broadcast %cst_14 : f32 to vector<128x128xf32>
      %20 = arith.select %18, %15, %19 : vector<128x128xi1>, vector<128x128xf32>
      %cst_15 = arith.constant dense<0xFF800000> : vector<128xf32>
      %21 = vector.multi_reduction <maximumf>, %20, %cst_15 [1] : vector<128x128xf32> to vector<128xf32>
      %22 = vector.shape_cast %21 : vector<128xf32> to vector<128x1xf32>
      %23 = vector.broadcast %22 : vector<128x1xf32> to vector<128x128xf32>
      %24 = arith.subf %20, %23 : vector<128x128xf32>
      %25 = math.exp %24 : vector<128x128xf32>
      %cst_16 = arith.constant dense<0.000000e+00> : vector<128xf32>
      %26 = vector.multi_reduction <add>, %25, %cst_16 [1] : vector<128x128xf32> to vector<128xf32>
      %27 = vector.shape_cast %26 : vector<128xf32> to vector<128x1xf32>
      %28 = math.log %27 : vector<128x1xf32>
      %29 = vector.broadcast %28 : vector<128x1xf32> to vector<128x128xf32>
      %30 = arith.subf %24, %29 : vector<128x128xf32>
      %c0_17 = arith.constant 0 : index
      %c0_18 = arith.constant 0 : index
      %31 = vector.load %arg5[%c0_17, %c0_18] : memref<128x128xf32, #tpu.memory_space<vmem>>, vector<128x128xf32>
      tpu.vector_store %arg5[%c0_17, %c0_18], %30 {strides = array<i32>} : memref<128x128xf32, #tpu.memory_space<vmem>>, vector<128x128xf32>,
    } else {
    }
    return
  }
  func.func @transform_0(%arg0: i32, %arg1: i32) -> (i32, i32) {
    %c0_i32 = arith.constant 0 : i32
    return %arg0, %arg1 : i32, i32
  }
  func.func @transform_1(%arg0: i32, %arg1: i32) -> (i32, i32) {
    %c0_i32 = arith.constant 0 : i32
    %c0_i32_0 = arith.constant 0 : i32
    return %arg1, %c0_i32 : i32, i32
  }
  func.func @transform_2(%arg0: i32, %arg1: i32) -> (i32, i32) {
    %c0_i32 = arith.constant 0 : i32
    %c0_i32_0 = arith.constant 0 : i32
    %c0_i32_1 = arith.constant 0 : i32
    return %c0_i32, %c0_i32_0 : i32, i32
  }
  func.func @transform_3(%arg0: i32, %arg1: i32) -> (i32, i32) {
    %c0_i32 = arith.constant 0 : i32
    %c0_i32_0 = arith.constant 0 : i32
    return %arg0, %c0_i32 : i32, i32
  }
}

</mosaic_0001>

<bundles_post_ra>
// kernel: gcn_net_forward.3
= control target key start
LH: loop header
LB: loop body
LE: loop exit
PB: predicated region body
PF: predicated region fallthrough
CT: control target
= control target key end

     0   :  { %vm94_vm0 = vcmask 1043456   ;;  %vm69_vm1 = vcmask 64512   ;;  %s355_s1 = inlined_call_operand.vmem [shape: bf16[8,128], index: 1, kind: input, shape index: {}]   ;;  %s356_s0 = inlined_call_operand.vmem [shape: bf16[128,8], index: 0, kind: input, shape index: {}]   ;;  %s357_s2 = inlined_call_operand.vmem [shape: bf16[128,128], index: 2, kind: output, shape index: {}]  }
   0x1   :  { %v28_v0 = vld [vmem:[%s355_s1] sm:$0xf]  ;;  %v225_v3 = vld [vmem:[%s356_s0 + $0x10] sm:$0xff]  ;;  %v224_v6 = vld [vmem:[%s356_s0 + $0x8] sm:$0xff] }
   0x2   :  { %v96_v1 = vsel %vm94_vm0, %v28_v0, 0  ;;  %v223_v2 = vld [vmem:[%s356_s0] sm:$0xff]  ;;  %v229_v5 = vld [vmem:[%s356_s0 + $0x30] sm:$0xff]  ;;  %v226_v7 = vld [vmem:[%s356_s0 + $0x18] sm:$0xff] }
   0x3   :  { %105 = vmatpush.bf16.msra.mxu0 %v96_v1  ;;  %278 = vmatpush.bf16.msra.mxu1 %v96_v1  ;;  %v227_v4 = vld [vmem:[%s356_s0 + $0x20] sm:$0xff]  ;;  %v228_v8 = vld [vmem:[%s356_s0 + $0x28] sm:$0xff]  ;;  %v230_v9 = vld [vmem:[%s356_s0 + $0x38] sm:$0xff] }
   0x4   :  { %279 = vmatpush.bf16.msra.mxu2 %v96_v1  ;;  %280 = vmatpush.bf16.msra.mxu3 %v96_v1 }
   0x6   :  { %215 = vmatmul.msk.bf16.vlgmr.msra.gmra.mxu0 %vm69_vm1, %v223_v2  ;;  %217 = vmatmul.msk.bf16.vlgmr.msra.gmra.mxu1 %vm69_vm1, %v225_v3 }
   0x7   :  { %219 = vmatmul.msk.bf16.vlgmr.msra.gmra.mxu2 %vm69_vm1, %v227_v4  ;;  %221 = vmatmul.msk.bf16.vlgmr.msra.gmra.mxu3 %vm69_vm1, %v229_v5 }
  0x16   :  { %216 = vmatmul.msk.bf16.gmra.mxu0 %vm69_vm1, %v224_v6  ;;  %218 = vmatmul.msk.bf16.gmra.mxu1 %vm69_vm1, %v226_v7 }
  0x17   :  { %220 = vmatmul.msk.bf16.gmra.mxu2 %vm69_vm1, %v228_v8  ;;  %222 = vmatmul.msk.bf16.gmra.mxu3 %vm69_vm1, %v230_v9 }
  0x83   :  { %v107_v10 = vpop.f32.mrf.mxu0  ;;  %v117_v11 = vpop.f32.mrf.mxu1 }
  0x8a   :  { %v127_v12 = vpop.f32.mrf.mxu2  ;;  %v137_v13 = vpop.f32.mrf.mxu3 }
  0x8b   :  { %v109_v14 = vpop.f32.mrf.mxu0  ;;  %v119_v15 = vpop.f32.mrf.mxu1 }
  0x8c   :  { %v234_v16 = vpack.c.bf16 %v109_v14, %v107_v10  ;;  %v244_v17 = vpack.c.bf16 %v119_v15, %v117_v11 }
  0x8e   :  { %235 = vst [vmem:[%s357_s2] sm:$0xff] %v234_v16  }
  0x8f   :  { %272 = vst [vmem:[%s357_s2 + $0x10] sm:$0xff] %v244_v17  }
  0x92   :  { %v129_v18 = vpop.f32.mrf.mxu2  ;;  %v139_v19 = vpop.f32.mrf.mxu3 }
  0x93   :  { %v254_v20 = vpack.c.bf16 %v129_v18, %v127_v12  ;;  %v264_v21 = vpack.c.bf16 %v139_v19, %v137_v13  ;;  %v112_v22 = vpop.f32.mrf.mxu0  ;;  %v122_v23 = vpop.f32.mrf.mxu1 }
  0x95   :  { %274 = vst [vmem:[%s357_s2 + $0x20] sm:$0xff] %v254_v20  }
  0x96   :  { %276 = vst [vmem:[%s357_s2 + $0x30] sm:$0xff] %v264_v21  }
  0x9a   :  { %v132_v24 = vpop.f32.mrf.mxu2  ;;  %v142_v25 = vpop.f32.mrf.mxu3 }
  0x9b   :  { %v114_v26 = vpop.f32.mrf.mxu0  ;;  %v124_v27 = vpop.f32.mrf.mxu1 }
  0x9c   :  { %v239_v28 = vpack.c.bf16 %v114_v26, %v112_v22  ;;  %v249_v29 = vpack.c.bf16 %v124_v27, %v122_v23 }
  0x9e   :  { %271 = vst [vmem:[%s357_s2 + $0x8] sm:$0xff] %v239_v28  }
  0x9f   :  { %273 = vst [vmem:[%s357_s2 + $0x18] sm:$0xff] %v249_v29  }
  0xa2   :  { %v134_v30 = vpop.f32.mrf.mxu2  ;;  %v144_v31 = vpop.f32.mrf.mxu3 }
  0xa3   :  { %v259_v32 = vpack.c.bf16 %v134_v30, %v132_v24  ;;  %v269_v33 = vpack.c.bf16 %v144_v31, %v142_v25 }
  0xa5   :  { %275 = vst [vmem:[%s357_s2 + $0x28] sm:$0xff] %v259_v32  }
  0xa6   :  { %277 = vst [vmem:[%s357_s2 + $0x38] sm:$0xff] %v269_v33  }

// kernel: gcn_net_forward.5
= control target key start
LH: loop header
LB: loop body
LE: loop exit
PB: predicated region body
PF: predicated region fallthrough
CT: control target
= control target key end

     0   :  { %v298_v16 = vlaneseq  ;;  %s942_s1 = inlined_call_operand.vmem [shape: bf16[128,128], index: 1, kind: input, shape index: {}]   ;;  %s943_s2 = inlined_call_operand.vmem [shape: f32[1,128], index: 2, kind: input, shape index: {}]   ;;  %s944_s0 = inlined_call_operand.vmem [shape: bf16[128,128], index: 0, kind: input, shape index: {}]   ;;  %s945_s3 = inlined_call_operand.vmem [shape: f32[128,128], index: 3, kind: output, shape index: {}]  }
   0x1   :  { %v576_v0 = vld [vmem:[%s942_s1 + $0x38] sm:$0xff]  ;;  %v575_v1 = vld [vmem:[%s942_s1 + $0x30] sm:$0xff]  ;;  %v574_v2 = vld [vmem:[%s942_s1 + $0x28] sm:$0xff] }
   0x2   :  { %178 = vmatpush.bf16.msra.mxu0 %v576_v0  ;;  %577 = vmatpush.bf16.msra.mxu1 %v576_v0  ;;  %v573_v3 = vld [vmem:[%s942_s1 + $0x20] sm:$0xff]  ;;  %v572_v4 = vld [vmem:[%s942_s1 + $0x18] sm:$0xff]  ;;  %v571_v5 = vld [vmem:[%s942_s1 + $0x10] sm:$0xff]  ;;  %v734_v17 = vand.u32 127, %v298_v16 }
   0x3   :  { %578 = vmatpush.bf16.msra.mxu2 %v576_v0  ;;  %579 = vmatpush.bf16.msra.mxu3 %v576_v0  ;;  %v570_v6 = vld [vmem:[%s942_s1 + $0x8] sm:$0xff]  ;;  %v569_v7 = vld [vmem:[%s942_s1] sm:$0xff]  ;;  %v563_v9 = vld [vmem:[%s944_s0 + $0x10] sm:$0xff] }
   0x4   :  { %v561_v8 = vld [vmem:[%s944_s0] sm:$0xff]  ;;  %v567_v11 = vld [vmem:[%s944_s0 + $0x30] sm:$0xff]  ;;  %v562_v12 = vld [vmem:[%s944_s0 + $0x8] sm:$0xff]  ;;  %vm300_vm0 = vcmp.lt.s32.totalorder %v734_v17, 5 }
   0x5   :  { %v565_v10 = vld [vmem:[%s944_s0 + $0x20] sm:$0xff]  ;;  %v564_v13 = vld [vmem:[%s944_s0 + $0x18] sm:$0xff]  ;;  %v566_v14 = vld [vmem:[%s944_s0 + $0x28] sm:$0xff] }
   0x6   :  { %179 = vmatpush.bf16.msra.mxu0 %v575_v1  ;;  %580 = vmatpush.bf16.msra.mxu1 %v575_v1  ;;  %v568_v15 = vld [vmem:[%s944_s0 + $0x38] sm:$0xff]  ;;  %v739_v18 = vld [vmem:[%s943_s2] ss:$0 sm:$0xff] }
   0x7   :  { %581 = vmatpush.bf16.msra.mxu2 %v575_v1  ;;  %582 = vmatpush.bf16.msra.mxu3 %v575_v1 }
   0xa   :  { %180 = vmatpush.bf16.msra.mxu0 %v574_v2  ;;  %583 = vmatpush.bf16.msra.mxu1 %v574_v2 }
   0xb   :  { %584 = vmatpush.bf16.msra.mxu2 %v574_v2  ;;  %585 = vmatpush.bf16.msra.mxu3 %v574_v2 }
   0xe   :  { %181 = vmatpush.bf16.msra.mxu0 %v573_v3  ;;  %586 = vmatpush.bf16.msra.mxu1 %v573_v3 }
   0xf   :  { %587 = vmatpush.bf16.msra.mxu2 %v573_v3  ;;  %588 = vmatpush.bf16.msra.mxu3 %v573_v3 }
  0x12   :  { %182 = vmatpush.bf16.msra.mxu0 %v572_v4  ;;  %589 = vmatpush.bf16.msra.mxu1 %v572_v4 }
  0x13   :  { %590 = vmatpush.bf16.msra.mxu2 %v572_v4  ;;  %591 = vmatpush.bf16.msra.mxu3 %v572_v4 }
  0x16   :  { %183 = vmatpush.bf16.msra.mxu0 %v571_v5  ;;  %592 = vmatpush.bf16.msra.mxu1 %v571_v5 }
  0x17   :  { %593 = vmatpush.bf16.msra.mxu2 %v571_v5  ;;  %594 = vmatpush.bf16.msra.mxu3 %v571_v5 }
  0x1a   :  { %184 = vmatpush.bf16.msra.mxu0 %v570_v6  ;;  %595 = vmatpush.bf16.msra.mxu1 %v570_v6 }
  0x1b   :  { %596 = vmatpush.bf16.msra.mxu2 %v570_v6  ;;  %597 = vmatpush.bf16.msra.mxu3 %v570_v6 }
  0x1e   :  { %185 = vmatpush.bf16.msra.mxu0 %v569_v7  ;;  %598 = vmatpush.bf16.msra.mxu1 %v569_v7 }
  0x1f   :  { %599 = vmatpush.bf16.msra.mxu2 %v569_v7  ;;  %600 = vmatpush.bf16.msra.mxu3 %v569_v7 }
  0x21   :  { %186 = vmatmul.bf16.vlgmr.msra.gmra.mxu0 %v561_v8  ;;  %196 = vmatmul.bf16.vlgmr.msra.gmra.mxu1 %v563_v9 }
  0x22   :  { %206 = vmatmul.bf16.vlgmr.msra.gmra.mxu2 %v565_v10  ;;  %216 = vmatmul.bf16.vlgmr.msra.gmra.mxu3 %v567_v11 }
  0x31   :  { %191 = vmatmul.bf16.gmra.mxu0 %v562_v12  ;;  %201 = vmatmul.bf16.gmra.mxu1 %v564_v13 }
  0x32   :  { %211 = vmatmul.bf16.gmra.mxu2 %v566_v14  ;;  %221 = vmatmul.bf16.gmra.mxu3 %v568_v15 }
  0x9e   :  { %v187_v19 = vpop.f32.mrf.mxu0  ;;  %v197_v20 = vpop.f32.mrf.mxu1 }
  0x9f   :  { %v282_v21 = vadd.f32 %v739_v18, %v187_v19  ;;  %v286_v22 = vadd.f32 %v739_v18, %v197_v20 }
  0xa1   :  { %v305_v23 = vsel %vm300_vm0, %v286_v22, -1e+30  ;;  %v301_v24 = vsel %vm300_vm0, %v282_v21, -1e+30 }
  0xa2   :  { %325 = vmax.xlane.f32.xlu2 %v305_v23  ;;  %317 = vmax.xlane.f32.xlu0 %v301_v24 }
  0xa5   :  { %v207_v25 = vpop.f32.mrf.mxu2  ;;  %v217_v26 = vpop.f32.mrf.mxu3 }
  0xa6   :  { %v290_v27 = vadd.f32 %v739_v18, %v207_v25  ;;  %v294_v28 = vadd.f32 %v739_v18, %v217_v26  ;;  %v189_v29 = vpop.f32.mrf.mxu0  ;;  %v199_v32 = vpop.f32.mrf.mxu1 }
  0xa7   :  { %v283_v33 = vadd.f32 %v739_v18, %v189_v29  ;;  %v287_v34 = vadd.f32 %v739_v18, %v199_v32 }
  0xa8   :  { %v309_v30 = vsel %vm300_vm0, %v290_v27, -1e+30  ;;  %v313_v31 = vsel %vm300_vm0, %v294_v28, -1e+30 }
  0xa9   :  { %v306_v39 = vsel %vm300_vm0, %v287_v34, -1e+30  ;;  %v302_v40 = vsel %vm300_vm0, %v283_v33, -1e+30 }
  0xaa   :  { %333 = vmax.xlane.f32.xlu2 %v309_v30  ;;  %341 = vmax.xlane.f32.xlu0 %v313_v31 }
  0xad   :  { %v209_v35 = vpop.f32.mrf.mxu2  ;;  %v219_v36 = vpop.f32.mrf.mxu3 }
  0xae   :  { %v192_v37 = vpop.f32.mrf.mxu0  ;;  %v291_v42 = vadd.f32 %v739_v18, %v209_v35  ;;  %v202_v47 = vpop.f32.mrf.mxu1  ;;  %v295_v1 = vadd.f32 %v739_v18, %v219_v36 }
  0xaf   :  { %v284_v38 = vadd.f32 %v739_v18, %v192_v37  ;;  %v288_v50 = vadd.f32 %v739_v18, %v202_v47 }
  0xb0   :  { %v774_v48 = vsel %vm300_vm0, %v291_v42, -1e+30  ;;  %v817_v2 = vsel %vm300_vm0, %v295_v1, -1e+30 }
  0xb1   :  { %v763_v41 = vsel %vm300_vm0, %v284_v38, -1e+30  ;;  %v783_v54 = vsel %vm300_vm0, %v288_v50, -1e+30 }
  0xb2   :  { %327 = vmax.xlane.f32.xlu2 %v306_v39  ;;  %319 = vmax.xlane.f32.xlu0 %v302_v40 }
  0xb3   :  { %321 = vmax.xlane.f32.xlu1 %v763_v41 }
  0xb5   :  { %v212_v43 = vpop.f32.mrf.mxu2  ;;  %v222_v45 = vpop.f32.mrf.mxu3 }
  0xb6   :  { %v292_v44 = vadd.f32 %v739_v18, %v212_v43  ;;  %v194_v49 = vpop.f32.mrf.mxu0  ;;  %v296_v57 = vadd.f32 %v739_v18, %v222_v45  ;;  %v204_v59 = vpop.f32.mrf.mxu1 }
  0xb7   :  { %v285_v52 = vadd.f32 %v739_v18, %v194_v49  ;;  %v289_v61 = vadd.f32 %v739_v18, %v204_v59 }
  0xb8   :  { %v770_v46 = vsel %vm300_vm0, %v292_v44, -1e+30  ;;  %v801_v62 = vsel %vm300_vm0, %v296_v57, -1e+30 }
  0xb9   :  { %v794_v58 = vsel %vm300_vm0, %v285_v52, -1e+30  ;;  %v811_v0 = vsel %vm300_vm0, %v289_v61, -1e+30 }
  0xba   :  { %335 = vmax.xlane.f32.xlu0 %v774_v48 }
  0xbb   :  { %337 = vmax.xlane.f32.xlu1 %v770_v46 }
  0xbd   :  { %v214_v51 = vpop.f32.mrf.mxu2  ;;  %v224_v56 = vpop.f32.mrf.mxu3 }
  0xbe   :  { %v293_v53 = vadd.f32 %v739_v18, %v214_v51  ;;  %v297_v60 = vadd.f32 %v739_v18, %v224_v56 }
  0xc0   :  { %v787_v55 = vsel %vm300_vm0, %v293_v53, -1e+30  ;;  %v805_v63 = vsel %vm300_vm0, %v297_v60, -1e+30 }
  0xc1   :  { %339 = vmax.xlane.f32.xlu2 %v787_v55 }
  0xc2   :  { %329 = vmax.xlane.f32.xlu0 %v783_v54 }
  0xc3   :  { %323 = vmax.xlane.f32.xlu1 %v794_v58 }
  0xc9   :  { %345 = vmax.xlane.f32.xlu2 %v801_v62 }
  0xca   :  { %347 = vmax.xlane.f32.xlu0 %v805_v63 }
  0xcb   :  { %331 = vmax.xlane.f32.xlu1 %v811_v0 }
  0xd3   :  { %343 = vmax.xlane.f32.xlu1 %v817_v2 }
 0x115   :  { %v326_v3 = vpop.xlane.xlu2 %325  ;;  %v318_v4 = vpop.xlane.xlu0 %317 }
 0x116   :  { %v820_v5 = vsub.f32 %v305_v23, %v326_v3  ;;  %v822_v6 = vsub.f32 %v301_v24, %v318_v4 }
 0x118   :  { %v373_v7 = vmul.f32 1.442695, %v820_v5  ;;  %v365_v8 = vmul.f32 1.442695, %v822_v6 }
 0x11a   :  { %602 = vpow2.f32 %v373_v7 }
 0x11b   :  { %604 = vpow2.f32 %v365_v8 }
 0x11d   :  { %v334_v9 = vpop.xlane.xlu2 %333  ;;  %v342_v10 = vpop.xlane.xlu0 %341 }
 0x11e   :  { %v826_v11 = vsub.f32 %v309_v30, %v334_v9  ;;  %v828_v12 = vsub.f32 %v313_v31, %v342_v10 }
 0x120   :  { %v603_v13 = vpop.eup %602  ;;  %v381_v14 = vmul.f32 1.442695, %v826_v11  ;;  %v389_v15 = vmul.f32 1.442695, %v828_v12 }
 0x121   :  { %v605_v16 = vpop.eup %604  ;;  %405 = vadd.xlane.f32.xlu2 %v603_v13 }
 0x122   :  { %606 = vpow2.f32 %v381_v14  ;;  %397 = vadd.xlane.f32.xlu1 %v605_v16 }
 0x123   :  { %608 = vpow2.f32 %v389_v15 }
 0x125   :  { %v328_v17 = vpop.xlane.xlu2 %327  ;;  %v320_v18 = vpop.xlane.xlu0 %319 }
 0x126   :  { %v832_v19 = vsub.f32 %v306_v39, %v328_v17  ;;  %v834_v20 = vsub.f32 %v302_v40, %v320_v18  ;;  %v322_v21 = vpop.xlane.xlu1 %321 }
 0x127   :  { %v839_v26 = vsub.f32 %v763_v41, %v322_v21 }
 0x128   :  { %v607_v22 = vpop.eup %606  ;;  %v375_v23 = vmul.f32 1.442695, %v832_v19  ;;  %v367_v24 = vmul.f32 1.442695, %v834_v20 }
 0x129   :  { %v609_v25 = vpop.eup %608  ;;  %413 = vadd.xlane.f32.xlu0 %v607_v22  ;;  %v369_v27 = vmul.f32 1.442695, %v839_v26 }
 0x12a   :  { %610 = vpow2.f32 %v375_v23  ;;  %421 = vadd.xlane.f32.xlu1 %v609_v25 }
 0x12b   :  { %612 = vpow2.f32 %v367_v24 }
 0x12c   :  { %614 = vpow2.f32 %v369_v27 }
 0x12d   :  { %v336_v28 = vpop.xlane.xlu0 %335 }
 0x12e   :  { %v843_v29 = vsub.f32 %v774_v48, %v336_v28  ;;  %v338_v30 = vpop.xlane.xlu1 %337 }
 0x12f   :  { %v846_v31 = vsub.f32 %v770_v46, %v338_v30 }
 0x130   :  { %v611_v32 = vpop.eup %610  ;;  %v383_v33 = vmul.f32 1.442695, %v843_v29 }
 0x131   :  { %v613_v34 = vpop.eup %612  ;;  %v385_v35 = vmul.f32 1.442695, %v846_v31  ;;  %407 = vadd.xlane.f32.xlu0 %v611_v32 }
 0x132   :  { %616 = vpow2.f32 %v383_v33  ;;  %399 = vadd.xlane.f32.xlu2 %v613_v34  ;;  %v615_v41 = vpop.eup %614 }
 0x133   :  { %618 = vpow2.f32 %v385_v35 }
 0x134   :  { %v340_v36 = vpop.xlane.xlu2 %339 }
 0x135   :  { %v851_v37 = vsub.f32 %v787_v55, %v340_v36  ;;  %v330_v38 = vpop.xlane.xlu0 %329 }
 0x136   :  { %v854_v39 = vsub.f32 %v783_v54, %v330_v38  ;;  %v324_v40 = vpop.xlane.xlu1 %323 }
 0x137   :  { %v387_v42 = vmul.f32 1.442695, %v851_v37  ;;  %v859_v46 = vsub.f32 %v794_v58, %v324_v40 }
 0x138   :  { %v617_v43 = vpop.eup %616  ;;  %v377_v44 = vmul.f32 1.442695, %v854_v39 }
 0x139   :  { %v619_v45 = vpop.eup %618  ;;  %620 = vpow2.f32 %v387_v42  ;;  %401 = vadd.xlane.f32.xlu0 %v615_v41  ;;  %415 = vadd.xlane.f32.xlu1 %v617_v43  ;;  %v371_v48 = vmul.f32 1.442695, %v859_v46 }
 0x13a   :  { %622 = vpow2.f32 %v377_v44  ;;  %417 = vadd.xlane.f32.xlu2 %v619_v45 }
 0x13b   :  { %624 = vpow2.f32 %v371_v48 }
 0x13c   :  { %v346_v47 = vpop.xlane.xlu2 %345 }
 0x13d   :  { %v863_v49 = vsub.f32 %v801_v62, %v346_v47  ;;  %v348_v53 = vpop.xlane.xlu0 %347 }
 0x13e   :  { %v332_v50 = vpop.xlane.xlu1 %331  ;;  %v871_v57 = vsub.f32 %v805_v63, %v348_v53 }
 0x13f   :  { %v621_v51 = vpop.eup %620  ;;  %v393_v52 = vmul.f32 1.442695, %v863_v49  ;;  %v867_v54 = vsub.f32 %v811_v0, %v332_v50 }
 0x140   :  { %v623_v55 = vpop.eup %622  ;;  %v395_v58 = vmul.f32 1.442695, %v871_v57 }
 0x141   :  { %v379_v56 = vmul.f32 1.442695, %v867_v54  ;;  %419 = vadd.xlane.f32.xlu0 %v621_v51  ;;  %409 = vadd.xlane.f32.xlu1 %v623_v55  ;;  %626 = vpow2.f32 %v393_v52  ;;  %v625_v60 = vpop.eup %624 }
 0x143   :  { %628 = vpow2.f32 %v379_v56 }
 0x144   :  { %630 = vpow2.f32 %v395_v58 }
 0x146   :  { %v344_v59 = vpop.xlane.xlu1 %343 }
 0x147   :  { %v875_v61 = vsub.f32 %v817_v2, %v344_v59  ;;  %v627_v62 = vpop.eup %626 }
 0x149   :  { %v629_v0 = vpop.eup %628  ;;  %v391_v1 = vmul.f32 1.442695, %v875_v61  ;;  %425 = vadd.xlane.f32.xlu0 %v627_v62  ;;  %403 = vadd.xlane.f32.xlu1 %v625_v60 }
 0x14a   :  { %411 = vadd.xlane.f32.xlu2 %v629_v0  ;;  %v631_v3 = vpop.eup %630 }
 0x14b   :  { %632 = vpow2.f32 %v391_v1 }
 0x151   :  { %v633_v63 = vpop.eup %632  ;;  %427 = vadd.xlane.f32.xlu1 %v631_v3 }
 0x152   :  { %423 = vadd.xlane.f32.xlu2 %v633_v63 }
 0x194   :  { %v406_v4 = vpop.xlane.xlu2 %405 }
 0x195   :  { %634 = vlog2.f32 %v406_v4  ;;  %v398_v7 = vpop.xlane.xlu1 %397 }
 0x196   :  { %636 = vlog2.f32 %v398_v7 }
 0x19b   :  { %v635_v8 = vpop.eup %634 }
 0x19c   :  { %v637_v2 = vpop.eup %636  ;;  %v438_v9 = vmul.f32 0.6931472, %v635_v8  ;;  %v414_v10 = vpop.xlane.xlu0 %413 }
 0x19d   :  { %v430_v13 = vmul.f32 0.6931472, %v637_v2  ;;  %638 = vlog2.f32 %v414_v10  ;;  %v422_v14 = vpop.xlane.xlu1 %421 }
 0x19e   :  { %v465_v15 = vsub.f32 %v820_v5, %v438_v9  ;;  %640 = vlog2.f32 %v422_v14 }
 0x19f   :  { %v461_v16 = vsub.f32 %v822_v6, %v430_v13 }
 0x1a0   :  { %481 = vst [vmem:[%s945_s3 + $0x20] sm:$0xff] %v465_v15 }
 0x1a1   :  { %477 = vst [vmem:[%s945_s3] sm:$0xff] %v461_v16 }
 0x1a3   :  { %v639_v17 = vpop.eup %638 }
 0x1a4   :  { %v641_v18 = vpop.eup %640  ;;  %v446_v21 = vmul.f32 0.6931472, %v639_v17  ;;  %v408_v22 = vpop.xlane.xlu0 %407 }
 0x1a5   :  { %v454_v23 = vmul.f32 0.6931472, %v641_v18  ;;  %v400_v24 = vpop.xlane.xlu2 %399  ;;  %642 = vlog2.f32 %v408_v22 }
 0x1a6   :  { %v469_v5 = vsub.f32 %v826_v11, %v446_v21  ;;  %644 = vlog2.f32 %v400_v24 }
 0x1a7   :  { %v473_v6 = vsub.f32 %v828_v12, %v454_v23 }
 0x1a8   :  { %485 = vst [vmem:[%s945_s3 + $0x40] sm:$0xff] %v469_v5 }
 0x1a9   :  { %489 = vst [vmem:[%s945_s3 + $0x60] sm:$0xff] %v473_v6 }
 0x1ab   :  { %v643_v25 = vpop.eup %642 }
 0x1ac   :  { %v645_v27 = vpop.eup %644  ;;  %v440_v28 = vmul.f32 0.6931472, %v643_v25  ;;  %v402_v30 = vpop.xlane.xlu0 %401 }
 0x1ad   :  { %v416_v32 = vpop.xlane.xlu1 %415  ;;  %v432_v33 = vmul.f32 0.6931472, %v645_v27  ;;  %646 = vlog2.f32 %v402_v30  ;;  %v418_v34 = vpop.xlane.xlu2 %417 }
 0x1ae   :  { %v466_v11 = vsub.f32 %v832_v19, %v440_v28  ;;  %648 = vlog2.f32 %v418_v34 }
 0x1af   :  { %v462_v12 = vsub.f32 %v834_v20, %v432_v33  ;;  %650 = vlog2.f32 %v416_v32 }
 0x1b0   :  { %482 = vst [vmem:[%s945_s3 + $0x28] sm:$0xff] %v466_v11 }
 0x1b1   :  { %478 = vst [vmem:[%s945_s3 + $0x8] sm:$0xff] %v462_v12 }
 0x1b3   :  { %v647_v35 = vpop.eup %646 }
 0x1b4   :  { %v649_v36 = vpop.eup %648  ;;  %v434_v38 = vmul.f32 0.6931472, %v647_v35  ;;  %v420_v40 = vpop.xlane.xlu0 %419 }
 0x1b5   :  { %v410_v41 = vpop.xlane.xlu1 %409  ;;  %v651_v42 = vpop.eup %650  ;;  %v450_v43 = vmul.f32 0.6931472, %v649_v36  ;;  %652 = vlog2.f32 %v420_v40 }
 0x1b6   :  { %v463_v19 = vsub.f32 %v839_v26, %v434_v38  ;;  %v448_v20 = vmul.f32 0.6931472, %v651_v42  ;;  %654 = vlog2.f32 %v410_v41 }
 0x1b7   :  { %v471_v44 = vsub.f32 %v846_v31, %v450_v43 }
 0x1b8   :  { %479 = vst [vmem:[%s945_s3 + $0x10] sm:$0xff] %v463_v19  ;;  %v470_v45 = vsub.f32 %v843_v29, %v448_v20 }
 0x1b9   :  { %487 = vst [vmem:[%s945_s3 + $0x50] sm:$0xff] %v471_v44 }
 0x1ba   :  { %486 = vst [vmem:[%s945_s3 + $0x48] sm:$0xff] %v470_v45 }
 0x1bb   :  { %v653_v47 = vpop.eup %652 }
 0x1bc   :  { %v655_v26 = vpop.eup %654  ;;  %v452_v48 = vmul.f32 0.6931472, %v653_v47  ;;  %v426_v50 = vpop.xlane.xlu0 %425 }
 0x1bd   :  { %v404_v51 = vpop.xlane.xlu1 %403  ;;  %v442_v31 = vmul.f32 0.6931472, %v655_v26  ;;  %656 = vlog2.f32 %v426_v50  ;;  %v412_v52 = vpop.xlane.xlu2 %411 }
 0x1be   :  { %v472_v53 = vsub.f32 %v851_v37, %v452_v48  ;;  %658 = vlog2.f32 %v412_v52 }
 0x1bf   :  { %v467_v29 = vsub.f32 %v854_v39, %v442_v31  ;;  %660 = vlog2.f32 %v404_v51 }
 0x1c0   :  { %488 = vst [vmem:[%s945_s3 + $0x58] sm:$0xff] %v472_v53 }
 0x1c1   :  { %483 = vst [vmem:[%s945_s3 + $0x30] sm:$0xff] %v467_v29 }
 0x1c3   :  { %v657_v55 = vpop.eup %656 }
 0x1c4   :  { %v659_v56 = vpop.eup %658  ;;  %v458_v58 = vmul.f32 0.6931472, %v657_v55 }
 0x1c5   :  { %v428_v59 = vpop.xlane.xlu1 %427  ;;  %v661_v60 = vpop.eup %660  ;;  %v444_v62 = vmul.f32 0.6931472, %v659_v56 }
 0x1c6   :  { %v424_v0 = vpop.xlane.xlu2 %423  ;;  %662 = vlog2.f32 %v428_v59  ;;  %v475_v37 = vsub.f32 %v863_v49, %v458_v58  ;;  %v436_v39 = vmul.f32 0.6931472, %v661_v60 }
 0x1c7   :  { %664 = vlog2.f32 %v424_v0  ;;  %v468_v1 = vsub.f32 %v867_v54, %v444_v62 }
 0x1c8   :  { %491 = vst [vmem:[%s945_s3 + $0x70] sm:$0xff] %v475_v37  ;;  %v464_v3 = vsub.f32 %v859_v46, %v436_v39 }
 0x1c9   :  { %484 = vst [vmem:[%s945_s3 + $0x38] sm:$0xff] %v468_v1 }
 0x1ca   :  { %480 = vst [vmem:[%s945_s3 + $0x18] sm:$0xff] %v464_v3 }
 0x1cc   :  { %v663_v63 = vpop.eup %662 }
 0x1cd   :  { %v665_v49 = vpop.eup %664  ;;  %v460_v4 = vmul.f32 0.6931472, %v663_v63 }
 0x1ce   :  { %v456_v7 = vmul.f32 0.6931472, %v665_v49 }
 0x1cf   :  { %v476_v54 = vsub.f32 %v871_v57, %v460_v4 }
 0x1d0   :  { %v474_v8 = vsub.f32 %v875_v61, %v456_v7 }
 0x1d1   :  { %492 = vst [vmem:[%s945_s3 + $0x78] sm:$0xff] %v476_v54 }
 0x1d2   :  { %490 = vst [vmem:[%s945_s3 + $0x68] sm:$0xff] %v474_v8 }

// kernel: gcn_net_forward.4
= control target key start
LH: loop header
LB: loop body
LE: loop exit
PB: predicated region body
PF: predicated region fallthrough
CT: control target
= control target key end

     0   :  { %s782_s1 = inlined_call_operand.vmem [shape: bf16[128,128], index: 1, kind: input, shape index: {}]   ;;  %s783_s2 = inlined_call_operand.vmem [shape: f32[1,128], index: 2, kind: input, shape index: {}]   ;;  %s784_s0 = inlined_call_operand.vmem [shape: bf16[128,128], index: 0, kind: input, shape index: {}]   ;;  %s785_s3 = inlined_call_operand.vmem [shape: bf16[128,128], index: 3, kind: input, shape index: {}]   ;;  %s786_s4 = inlined_call_operand.vmem [shape: bf16[128,128], index: 4, kind: output, shape index: {}]  }
   0x1   :  { %v585_v0 = vld [vmem:[%s782_s1 + $0x38] sm:$0xff]  ;;  %v584_v1 = vld [vmem:[%s782_s1 + $0x30] sm:$0xff]  ;;  %v583_v2 = vld [vmem:[%s782_s1 + $0x28] sm:$0xff] }
   0x2   :  { %181 = vmatpush.bf16.msra.mxu0 %v585_v0  ;;  %641 = vmatpush.bf16.msra.mxu2 %v585_v0  ;;  %v582_v3 = vld [vmem:[%s782_s1 + $0x20] sm:$0xff]  ;;  %v581_v4 = vld [vmem:[%s782_s1 + $0x18] sm:$0xff]  ;;  %v580_v5 = vld [vmem:[%s782_s1 + $0x10] sm:$0xff] }
   0x3   :  { %v579_v6 = vld [vmem:[%s782_s1 + $0x8] sm:$0xff]  ;;  %v578_v7 = vld [vmem:[%s782_s1] sm:$0xff]  ;;  %v593_v12 = vld [vmem:[%s785_s3 + $0x38] sm:$0xff] }
   0x4   :  { %v570_v8 = vld [vmem:[%s784_s0] sm:$0xff]  ;;  %v571_v10 = vld [vmem:[%s784_s0 + $0x8] sm:$0xff]  ;;  %389 = vmatpush.bf16.msra.mxu1 %v593_v12  ;;  %v592_v13 = vld [vmem:[%s785_s3 + $0x30] sm:$0xff]  ;;  %649 = vmatpush.bf16.msra.mxu3 %v593_v12 }
   0x5   :  { %v574_v9 = vld [vmem:[%s784_s0 + $0x20] sm:$0xff]  ;;  %v575_v11 = vld [vmem:[%s784_s0 + $0x28] sm:$0xff]  ;;  %v572_v16 = vld [vmem:[%s784_s0 + $0x10] sm:$0xff] }
   0x6   :  { %182 = vmatpush.bf16.msra.mxu0 %v584_v1  ;;  %642 = vmatpush.bf16.msra.mxu2 %v584_v1  ;;  %v591_v14 = vld [vmem:[%s785_s3 + $0x28] sm:$0xff]  ;;  %v590_v15 = vld [vmem:[%s785_s3 + $0x20] sm:$0xff]  ;;  %v576_v17 = vld [vmem:[%s784_s0 + $0x30] sm:$0xff] }
   0x7   :  { %v573_v18 = vld [vmem:[%s784_s0 + $0x18] sm:$0xff]  ;;  %v588_v21 = vld [vmem:[%s785_s3 + $0x10] sm:$0xff]  ;;  %v587_v22 = vld [vmem:[%s785_s3 + $0x8] sm:$0xff] }
   0x8   :  { %390 = vmatpush.bf16.msra.mxu1 %v592_v13  ;;  %650 = vmatpush.bf16.msra.mxu3 %v592_v13  ;;  %v577_v19 = vld [vmem:[%s784_s0 + $0x38] sm:$0xff]  ;;  %v586_v23 = vld [vmem:[%s785_s3] sm:$0xff] }
   0x9   :  { %v589_v20 = vld [vmem:[%s785_s3 + $0x18] sm:$0xff]  ;;  %v657_v25 = vld [vmem:[%s783_s2] ss:$0 sm:$0xff] }
   0xa   :  { %183 = vmatpush.bf16.msra.mxu0 %v583_v2  ;;  %643 = vmatpush.bf16.msra.mxu2 %v583_v2 }
   0xc   :  { %391 = vmatpush.bf16.msra.mxu1 %v591_v14  ;;  %651 = vmatpush.bf16.msra.mxu3 %v591_v14 }
   0xe   :  { %184 = vmatpush.bf16.msra.mxu0 %v582_v3  ;;  %644 = vmatpush.bf16.msra.mxu2 %v582_v3 }
  0x10   :  { %392 = vmatpush.bf16.msra.mxu1 %v590_v15  ;;  %652 = vmatpush.bf16.msra.mxu3 %v590_v15 }
  0x12   :  { %185 = vmatpush.bf16.msra.mxu0 %v581_v4  ;;  %645 = vmatpush.bf16.msra.mxu2 %v581_v4 }
  0x14   :  { %393 = vmatpush.bf16.msra.mxu1 %v589_v20  ;;  %653 = vmatpush.bf16.msra.mxu3 %v589_v20 }
  0x16   :  { %186 = vmatpush.bf16.msra.mxu0 %v580_v5  ;;  %646 = vmatpush.bf16.msra.mxu2 %v580_v5 }
  0x18   :  { %394 = vmatpush.bf16.msra.mxu1 %v588_v21  ;;  %654 = vmatpush.bf16.msra.mxu3 %v588_v21 }
  0x1a   :  { %187 = vmatpush.bf16.msra.mxu0 %v579_v6  ;;  %647 = vmatpush.bf16.msra.mxu2 %v579_v6 }
  0x1c   :  { %395 = vmatpush.bf16.msra.mxu1 %v587_v22  ;;  %655 = vmatpush.bf16.msra.mxu3 %v587_v22 }
  0x1e   :  { %188 = vmatpush.bf16.msra.mxu0 %v578_v7  ;;  %648 = vmatpush.bf16.msra.mxu2 %v578_v7 }
  0x20   :  { %396 = vmatpush.bf16.msra.mxu1 %v586_v23  ;;  %656 = vmatpush.bf16.msra.mxu3 %v586_v23 }
  0x21   :  { %189 = vmatmul.bf16.vlgmr.msra.gmra.mxu0 %v570_v8  ;;  %209 = vmatmul.bf16.vlgmr.msra.gmra.mxu2 %v574_v9 }
  0x31   :  { %194 = vmatmul.bf16.gmra.mxu0 %v571_v10  ;;  %214 = vmatmul.bf16.gmra.mxu2 %v575_v11 }
  0x41   :  { %199 = vmatmul.bf16.gmra.mxu0 %v572_v16  ;;  %219 = vmatmul.bf16.gmra.mxu2 %v576_v17 }
  0x51   :  { %204 = vmatmul.bf16.gmra.mxu0 %v573_v18  ;;  %224 = vmatmul.bf16.gmra.mxu2 %v577_v19 }
  0x9e   :  { %v190_v24 = vpop.f32.mrf.mxu0 }
  0x9f   :  { %v285_v26 = vadd.f32 %v657_v25, %v190_v24 }
  0xa1   :  { %v301_v29 = vmax.f32 %v285_v26, 0.0 }
  0xa4   :  { %v210_v27 = vpop.f32.mrf.mxu2 }
  0xa5   :  { %v293_v32 = vadd.f32 %v657_v25, %v210_v27 }
  0xa6   :  { %v192_v28 = vpop.f32.mrf.mxu0 }
  0xa7   :  { %v286_v30 = vadd.f32 %v657_v25, %v192_v28  ;;  %v309_v37 = vmax.f32 %v293_v32, 0.0 }
  0xa9   :  { %v302_v31 = vmax.f32 %v286_v30, 0.0 }
  0xab   :  { %v317_v33 = vpack.c.bf16 %v302_v31, %v301_v29 }
  0xac   :  { %v212_v34 = vpop.f32.mrf.mxu2 }
  0xad   :  { %v294_v35 = vadd.f32 %v657_v25, %v212_v34  ;;  %397 = vmatmul.bf16.vlgmr.msra.gmra.mxu1 %v317_v33 }
  0xae   :  { %v195_v36 = vpop.f32.mrf.mxu0 }
  0xaf   :  { %v310_v38 = vmax.f32 %v294_v35, 0.0  ;;  %v287_v40 = vadd.f32 %v657_v25, %v195_v36 }
  0xb1   :  { %v321_v39 = vpack.c.bf16 %v310_v38, %v309_v37  ;;  %v303_v43 = vmax.f32 %v287_v40, 0.0 }
  0xb3   :  { %417 = vmatmul.bf16.vlgmr.msra.gmra.mxu3 %v321_v39 }
  0xb4   :  { %v215_v41 = vpop.f32.mrf.mxu2 }
  0xb5   :  { %v295_v46 = vadd.f32 %v657_v25, %v215_v41 }
  0xb6   :  { %v197_v42 = vpop.f32.mrf.mxu0 }
  0xb7   :  { %v288_v44 = vadd.f32 %v657_v25, %v197_v42  ;;  %v311_v51 = vmax.f32 %v295_v46, 0.0 }
  0xb9   :  { %v304_v45 = vmax.f32 %v288_v44, 0.0 }
  0xbb   :  { %v318_v47 = vpack.c.bf16 %v304_v45, %v303_v43 }
  0xbc   :  { %v217_v48 = vpop.f32.mrf.mxu2 }
  0xbd   :  { %v296_v49 = vadd.f32 %v657_v25, %v217_v48  ;;  %402 = vmatmul.bf16.gmra.mxu1 %v318_v47 }
  0xbe   :  { %v200_v50 = vpop.f32.mrf.mxu0 }
  0xbf   :  { %v312_v52 = vmax.f32 %v296_v49, 0.0  ;;  %v289_v54 = vadd.f32 %v657_v25, %v200_v50 }
  0xc1   :  { %v322_v53 = vpack.c.bf16 %v312_v52, %v311_v51  ;;  %v305_v57 = vmax.f32 %v289_v54, 0.0 }
  0xc3   :  { %422 = vmatmul.bf16.gmra.mxu3 %v322_v53 }
  0xc4   :  { %v220_v55 = vpop.f32.mrf.mxu2 }
  0xc5   :  { %v297_v60 = vadd.f32 %v657_v25, %v220_v55 }
  0xc6   :  { %v202_v56 = vpop.f32.mrf.mxu0 }
  0xc7   :  { %v290_v58 = vadd.f32 %v657_v25, %v202_v56  ;;  %v313_v1 = vmax.f32 %v297_v60, 0.0 }
  0xc9   :  { %v306_v59 = vmax.f32 %v290_v58, 0.0 }
  0xcb   :  { %v319_v61 = vpack.c.bf16 %v306_v59, %v305_v57 }
  0xcc   :  { %v222_v62 = vpop.f32.mrf.mxu2 }
  0xcd   :  { %v298_v63 = vadd.f32 %v657_v25, %v222_v62  ;;  %407 = vmatmul.bf16.gmra.mxu1 %v319_v61 }
  0xce   :  { %v205_v0 = vpop.f32.mrf.mxu0 }
  0xcf   :  { %v314_v2 = vmax.f32 %v298_v63, 0.0  ;;  %v291_v4 = vadd.f32 %v657_v25, %v205_v0 }
  0xd1   :  { %v323_v3 = vpack.c.bf16 %v314_v2, %v313_v1  ;;  %v307_v7 = vmax.f32 %v291_v4, 0.0 }
  0xd3   :  { %427 = vmatmul.bf16.gmra.mxu3 %v323_v3 }
  0xd4   :  { %v225_v5 = vpop.f32.mrf.mxu2 }
  0xd5   :  { %v299_v10 = vadd.f32 %v657_v25, %v225_v5 }
  0xd6   :  { %v207_v6 = vpop.f32.mrf.mxu0 }
  0xd7   :  { %v292_v8 = vadd.f32 %v657_v25, %v207_v6  ;;  %v315_v14 = vmax.f32 %v299_v10, 0.0 }
  0xd9   :  { %v308_v9 = vmax.f32 %v292_v8, 0.0 }
  0xdb   :  { %v320_v11 = vpack.c.bf16 %v308_v9, %v307_v7 }
  0xdc   :  { %v227_v12 = vpop.f32.mrf.mxu2 }
  0xdd   :  { %v300_v13 = vadd.f32 %v657_v25, %v227_v12  ;;  %412 = vmatmul.bf16.gmra.mxu1 %v320_v11 }
  0xdf   :  { %v316_v15 = vmax.f32 %v300_v13, 0.0 }
  0xe1   :  { %v324_v16 = vpack.c.bf16 %v316_v15, %v315_v14 }
  0xe3   :  { %432 = vmatmul.bf16.gmra.mxu3 %v324_v16 }
 0x12a   :  { %v398_v17 = vpop.f32.mrf.mxu1 }
 0x132   :  { %v400_v18 = vpop.f32.mrf.mxu1 }
 0x133   :  { %v597_v19 = vpack.c.bf16 %v400_v18, %v398_v17 }
 0x135   :  { %598 = vst [vmem:[%s786_s4] sm:$0xff] %v597_v19  }
 0x136   :  { %v418_v20 = vpop.f32.mrf.mxu3 }
 0x13a   :  { %v403_v21 = vpop.f32.mrf.mxu1 }
 0x13e   :  { %v420_v22 = vpop.f32.mrf.mxu3 }
 0x13f   :  { %v617_v23 = vpack.c.bf16 %v420_v22, %v418_v20 }
 0x141   :  { %637 = vst [vmem:[%s786_s4 + $0x20] sm:$0xff] %v617_v23  }
 0x142   :  { %v405_v24 = vpop.f32.mrf.mxu1 }
 0x143   :  { %v602_v25 = vpack.c.bf16 %v405_v24, %v403_v21 }
 0x145   :  { %634 = vst [vmem:[%s786_s4 + $0x8] sm:$0xff] %v602_v25  }
 0x146   :  { %v423_v26 = vpop.f32.mrf.mxu3 }
 0x14a   :  { %v408_v27 = vpop.f32.mrf.mxu1 }
 0x14e   :  { %v425_v28 = vpop.f32.mrf.mxu3 }
 0x14f   :  { %v622_v29 = vpack.c.bf16 %v425_v28, %v423_v26 }
 0x151   :  { %638 = vst [vmem:[%s786_s4 + $0x28] sm:$0xff] %v622_v29  }
 0x152   :  { %v410_v30 = vpop.f32.mrf.mxu1 }
 0x153   :  { %v607_v31 = vpack.c.bf16 %v410_v30, %v408_v27 }
 0x155   :  { %635 = vst [vmem:[%s786_s4 + $0x10] sm:$0xff] %v607_v31  }
 0x156   :  { %v428_v32 = vpop.f32.mrf.mxu3 }
 0x15a   :  { %v413_v33 = vpop.f32.mrf.mxu1 }
 0x15e   :  { %v430_v34 = vpop.f32.mrf.mxu3 }
 0x15f   :  { %v627_v35 = vpack.c.bf16 %v430_v34, %v428_v32 }
 0x161   :  { %639 = vst [vmem:[%s786_s4 + $0x30] sm:$0xff] %v627_v35  }
 0x162   :  { %v415_v36 = vpop.f32.mrf.mxu1 }
 0x163   :  { %v612_v37 = vpack.c.bf16 %v415_v36, %v413_v33 }
 0x165   :  { %636 = vst [vmem:[%s786_s4 + $0x18] sm:$0xff] %v612_v37  }
 0x166   :  { %v433_v38 = vpop.f32.mrf.mxu3 }
 0x16e   :  { %v435_v39 = vpop.f32.mrf.mxu3 }
 0x16f   :  { %v632_v40 = vpack.c.bf16 %v435_v39, %v433_v38 }
 0x171   :  { %640 = vst [vmem:[%s786_s4 + $0x38] sm:$0xff] %v632_v40  }

</bundles_post_ra>
